<compile_context>
chip_gen: v5e
topology: v5e:2x2
jax: 0.10.0
libtpu: 0.0.40
codegen_flags: <defaults>
</compile_context>

<pallas_src>
import functools
import math

import jax
import jax.numpy as jnp
from jax import lax
from jax.experimental import pallas as pl
from jax.experimental.pallas import tpu as pltpu

# ------------------------- synthetic model hyper-params -----------------------
B        = 2                      # batch
CH       = 3                      # image channels
IMG      = 32                     # image H = W
PATCH    = 16                     # patch size -> S_ENC = (32/16)^2 = 4 tokens
S_ENC    = (IMG // PATCH) ** 2
T_DEC    = 8                      # decoder / label sequence length
HIDDEN   = 128                    # model width
HEADS    = 4
HEAD_D   = HIDDEN // HEADS
FFN      = 256
VOCAB    = 256
START_TOKEN  = 1
DROPOUT_RATE = 0.1
IGNORE_INDEX = -100               # HF CrossEntropyLoss default ignore_index


# ------------------------------ in-kernel helpers -----------------------------

def _ln(x, g, b, eps=1e-5):
    mu = jnp.mean(x, axis=-1, keepdims=True)
    var = jnp.mean((x - mu) ** 2, axis=-1, keepdims=True)
    return (x - mu) * lax.rsqrt(var + eps) * g + b


def _softmax_rows(s):
    m = jnp.max(s, axis=-1, keepdims=True)
    p = jnp.exp(s - m)
    # exact reciprocal keeps the kernel runnable in interpret mode and
    # bit-closer to the PyTorch softmax (approx=True would use the EUP slot).
    return p * pl.reciprocal(jnp.sum(p, axis=-1, keepdims=True), approx=False)


# ============================== Pallas kernels ================================

def _patch_embed_kernel(p_ref, w_ref, b_ref, pos_ref, o_ref):
    """Patch projection (stride-P conv as matmul) + bias + positional embed."""
    y = jnp.dot(p_ref[...], w_ref[...], preferred_element_type=jnp.float32)
    o_ref[...] = (y + b_ref[...] + pos_ref[...]).astype(o_ref.dtype)


def _attn_block_kernel(*refs, heads, head_d, causal, self_attn, scale):
    """Fused pre-LN multi-head attention block with residual, one batch/step.

    self-attention : x -> x + Wo . attn(LN(x)Wq, LN(x)Wk, LN(x)Wv)
    cross-attention: x -> x + Wo . attn(LN(x)Wq,   mem Wk,   mem Wv)
    Q/K/V weights are fused into one (D, 3D) matrix so self-attention is a
    single 384-wide MXU matmul.
    """
    if self_attn:
        (x_ref, g_ref, bln_ref, wqkv_ref, bqkv_ref, wo_ref, bo_ref,
         o_ref) = refs
    else:
        (x_ref, mem_ref, g_ref, bln_ref, wqkv_ref, bqkv_ref, wo_ref, bo_ref,
         o_ref) = refs

    d = heads * head_d
    x = x_ref[0].astype(jnp.float32)                              # (Tq, D)
    h = _ln(x, g_ref[...].astype(jnp.float32),
            bln_ref[...].astype(jnp.float32))

    wqkv = wqkv_ref[...]
    bqkv = bqkv_ref[...].astype(jnp.float32)
    if self_attn:
        qkv = jnp.dot(h, wqkv, preferred_element_type=jnp.float32) + bqkv
        q, kv = qkv[:, :d], qkv[:, d:]                            # (Tq,D),(Tq,2D)
    else:
        mem = mem_ref[0].astype(jnp.float32)                      # (Tk, D)
        q = jnp.dot(h, wqkv[:, :d],
                    preferred_element_type=jnp.float32) + bqkv[:, :d]
        kv = jnp.dot(mem, wqkv[:, d:],
                     preferred_element_type=jnp.float32) + bqkv[:, d:]

    ctx_parts = []
    for hh in range(heads):                                       # static unroll
        lo = hh * head_d
        qh = q[:, lo:lo + head_d]                                 # (Tq, Dh)
        kh = kv[:, lo:lo + head_d]                                # (Tk, Dh)
        vh = kv[:, d + lo:d + lo + head_d]                        # (Tk, Dh)
        s = lax.dot_general(qh, kh, (((1,), (1,)), ((), ())),
                            preferred_element_type=jnp.float32) * scale
        if causal:
            tq, tk = s.shape
            ri = lax.broadcasted_iota(jnp.int32, (tq, tk), 0)
            ci = lax.broadcasted_iota(jnp.int32, (tq, tk), 1)
            s = jnp.where(ci <= ri, s, -1e30)
        p = _softmax_rows(s)
        ctx_parts.append(jnp.dot(p, vh, preferred_element_type=jnp.float32))
    ctx = jnp.concatenate(ctx_parts, axis=-1)                     # (Tq, D)

    attn = jnp.dot(ctx, wo_ref[...], preferred_element_type=jnp.float32)
    attn = attn + bo_ref[...].astype(jnp.float32)
    o_ref[0] = (x + attn).astype(o_ref.dtype)


def _ffn_block_kernel(*refs, final_ln):
    """Fused pre-LN GELU MLP block with residual (+ optional trailing LN)."""
    if final_ln:
        (x_ref, g_ref, b_ref, w1_ref, b1_ref, w2_ref, b2_ref, fg_ref, fb_ref,
         o_ref) = refs
    else:
        (x_ref, g_ref, b_ref, w1_ref, b1_ref, w2_ref, b2_ref, o_ref) = refs

    x = x_ref[0].astype(jnp.float32)                              # (T, D)
    h = _ln(x, g_ref[...].astype(jnp.float32),
            b_ref[...].astype(jnp.float32))
    h = jnp.dot(h, w1_ref[...], preferred_element_type=jnp.float32) + b1_ref[...]
    # TODO(synk): HF TrOCR uses exact (erf) GELU; the tanh approximation is kept
    # for portable lowering -> small systematic numerical difference.
    h = jax.nn.gelu(h, approximate=True)
    h = jnp.dot(h, w2_ref[...], preferred_element_type=jnp.float32) + b2_ref[...]
    y = x + h
    if final_ln:
        y = _ln(y, fg_ref[...].astype(jnp.float32),
                fb_ref[...].astype(jnp.float32))
    o_ref[0] = y.astype(o_ref.dtype)


def _head_kernel(*refs, training, rate):
    """Final LN -> LM head -> masked CE (pre-dropout) -> dropout on logits."""
    if training:
        (x_ref, g_ref, b_ref, w_ref, bias_ref, lbl_ref, u_ref,
         logits_ref, loss_ref) = refs
    else:
        (x_ref, g_ref, b_ref, w_ref, bias_ref, lbl_ref,
         logits_ref, loss_ref) = refs

    x = x_ref[...].astype(jnp.float32)                            # (M, D)
    h = _ln(x, g_ref[...].astype(jnp.float32),
            b_ref[...].astype(jnp.float32))
    logits = jnp.dot(h, w_ref[...], preferred_element_type=jnp.float32)
    logits = logits + bias_ref[...].astype(jnp.float32)           # (M, V)

    # --- cross-entropy on PRE-dropout logits (what the base model computes) ---
    lbl = lbl_ref[...]                                            # (M, 1) int32
    m = jnp.max(logits, axis=-1, keepdims=True)
    lse = jnp.log(jnp.sum(jnp.exp(logits - m), axis=-1, keepdims=True)) + m
    col = lax.broadcasted_iota(jnp.int32, logits.shape, 1)
    tgt = jnp.sum(jnp.where(col == lbl, logits, 0.0), axis=-1, keepdims=True)
    per_row = lse - tgt                                           # (M, 1)
    valid = (lbl != IGNORE_INDEX).astype(jnp.float32)             # (M, 1)
    total = jnp.sum(per_row * valid, axis=0, keepdims=True)       # (1, 1)
    count = jnp.sum(valid, axis=0, keepdims=True)                 # (1, 1)
    loss_ref[...] = total / jnp.maximum(count, 1.0)

    # --- RegularizedTrOCR wrapper: dropout touches only the returned logits ---
    out = logits
    if training:
        keep = u_ref[...] >= rate
        out = jnp.where(keep, logits * (1.0 / (1.0 - rate)), 0.0)
    logits_ref[...] = out.astype(logits_ref.dtype)


# ============================ Pallas call wrappers ============================

_VMEM = pl.BlockSpec(memory_space=pltpu.MemorySpace.VMEM)


def _bcast_spec(shape):
    # Whole-array block, identical for every batch grid step (Pallas skips the
    # re-fetch when the block index is unchanged).
    return pl.BlockSpec(shape, lambda b: (0,) * len(shape))


def pallas_patch_embed(patches, w, b, pos):
    m = patches.shape[0]
    n = w.shape[1]
    return pl.pallas_call(
        _patch_embed_kernel,
        out_shape=jax.ShapeDtypeStruct((m, n), patches.dtype),
        in_specs=[_VMEM, _VMEM, _VMEM, _VMEM],
        out_specs=_VMEM,
    )(patches, w, b.reshape(1, n), pos)


def pallas_attn_block(x, mem, ln_g, ln_b, p, causal):
    bsz, tq, d = x.shape
    self_attn = mem is None

    args = [x]
    in_specs = [pl.BlockSpec((1, tq, d), lambda b: (b, 0, 0))]
    if not self_attn:
        tk = mem.shape[1]
        args.append(mem)
        in_specs.append(pl.BlockSpec((1, tk, d), lambda b: (b, 0, 0)))

    weights = [ln_g.reshape(1, d), ln_b.reshape(1, d),
               p["wqkv"], p["bqkv"].reshape(1, -1),
               p["wo"], p["bo"].reshape(1, -1)]
    args += weights
    in_specs += [_bcast_spec(w.shape) for w in weights]

    kernel = functools.partial(
        _attn_block_kernel, heads=HEADS, head_d=HEAD_D, causal=causal,
        self_attn=self_attn, scale=1.0 / math.sqrt(HEAD_D))
    return pl.pallas_call(
        kernel,
        out_shape=jax.ShapeDtypeStruct((bsz, tq, d), x.dtype),
        grid=(bsz,),
        in_specs=in_specs,
        out_specs=pl.BlockSpec((1, tq, d), lambda b: (b, 0, 0)),
        compiler_params=pltpu.CompilerParams(
            dimension_semantics=("parallel",)),
    )(*args)


def pallas_ffn_block(x, ln_g, ln_b, w1, b1, w2, b2, final_ln=None):
    bsz, t, d = x.shape
    f = w1.shape[1]
    weights = [ln_g.reshape(1, d), ln_b.reshape(1, d),
               w1, b1.reshape(1, f), w2, b2.reshape(1, d)]
    if final_ln is not None:
        fg, fb = final_ln
        weights += [fg.reshape(1, d), fb.reshape(1, d)]
    args = [x] + weights
    in_specs = ([pl.BlockSpec((1, t, d), lambda b: (b, 0, 0))]
                + [_bcast_spec(w.shape) for w in weights])

    kernel = functools.partial(_ffn_block_kernel,
                               final_ln=final_ln is not None)
    return pl.pallas_call(
        kernel,
        out_shape=jax.ShapeDtypeStruct((bsz, t, d), x.dtype),
        grid=(bsz,),
        in_specs=in_specs,
        out_specs=pl.BlockSpec((1, t, d), lambda b: (b, 0, 0)),
        compiler_params=pltpu.CompilerParams(
            dimension_semantics=("parallel",)),
    )(*args)


def pallas_head(x2d, lnf_g, lnf_b, lm_w, lm_b, labels1d, uniforms,
                training, rate):
    m, d = x2d.shape
    v = lm_w.shape[1]
    args = [x2d, lnf_g.reshape(1, d), lnf_b.reshape(1, d),
            lm_w, lm_b.reshape(1, v),
            labels1d.reshape(m, 1).astype(jnp.int32)]
    if training:
        args.append(uniforms)

    kernel = functools.partial(_head_kernel, training=training, rate=rate)
    logits, loss = pl.pallas_call(
        kernel,
        out_shape=(jax.ShapeDtypeStruct((m, v), x2d.dtype),
                   jax.ShapeDtypeStruct((1, 1), jnp.float32)),
        in_specs=[_VMEM] * len(args),
        out_specs=(_VMEM, _VMEM),
    )(*args)
    return logits, loss[0, 0]


# =============================== forward pass =================================

def regularized_trocr_forward(params, pixel_values, labels, training=True,
                              dropout_rate=DROPOUT_RATE, dropout_rng=None):
    """Equivalent of RegularizedTrOCR.forward(pixel_values, labels)."""
    batch, ch, img_h, img_w = pixel_values.shape
    p = PATCH
    s_enc = (img_h // p) * (img_w // p)

    # --- vision encoder -------------------------------------------------------
    # patchify NCHW -> [B*S, C*P*P]  (replaces the stride-P patch conv)
    patches = pixel_values.reshape(batch, ch, img_h // p, p, img_w // p, p)
    patches = patches.transpose(0, 2, 4, 1, 3, 5).reshape(batch * s_enc,
                                                          ch * p * p)
    pos = jnp.broadcast_to(params["enc_pos"][None], (batch, s_enc, HIDDEN))
    enc = pallas_patch_embed(patches, params["patch_w"], params["patch_b"],
                             pos.reshape(batch * s_enc, HIDDEN))
    enc = enc.reshape(batch, s_enc, HIDDEN)

    pe = params["enc"]
    enc = pallas_attn_block(enc, None, pe["ln1_g"], pe["ln1_b"], pe["self"],
                            causal=False)
    enc = pallas_ffn_block(enc, pe["ln2_g"], pe["ln2_b"],
                           pe["fc1_w"], pe["fc1_b"], pe["fc2_w"], pe["fc2_b"],
                           final_ln=(params["enc_lnf_g"], params["enc_lnf_b"]))

    # --- text decoder ---------------------------------------------------------
    t = labels.shape[1]
    dec_ids = jnp.concatenate(
        [jnp.full((batch, 1), START_TOKEN, jnp.int32), labels[:, :-1]], axis=1)
    # TODO(synk): token-embedding lookup stays a JAX gather (no Pallas win at
    # this size).
    dec = jnp.take(params["tok_emb"], dec_ids, axis=0) + params["dec_pos"][None]

    pd = params["dec"]
    dec = pallas_attn_block(dec, None, pd["ln1_g"], pd["ln1_b"], pd["self"],
                            causal=True)
    dec = pallas_attn_block(dec, enc, pd["lnx_g"], pd["lnx_b"], pd["cross"],
                            causal=False)
    dec = pallas_ffn_block(dec, pd["ln2_g"], pd["ln2_b"],
                           pd["fc1_w"], pd["fc1_b"], pd["fc2_w"], pd["fc2_b"])

    # --- fused LM head + CE loss + wrapper dropout ----------------------------
    uniforms = None
    if training:
        if dropout_rng is None:
            dropout_rng = jax.random.PRNGKey(0)
        # pltpu.prng_* has no interpret/CPU lowering, so the dropout uniforms
        # are drawn with jax.random outside; mask compare + scale run in-kernel.
        uniforms = jax.random.uniform(dropout_rng, (batch * t, VOCAB),
                                      jnp.float32)
    logits2d, loss = pallas_head(dec.reshape(batch * t, HIDDEN),
                                 params["dec_lnf_g"], params["dec_lnf_b"],
                                 params["lm_w"], params["lm_b"],
                                 labels.reshape(-1), uniforms,
                                 training=training, rate=dropout_rate)
    return loss, logits2d.reshape(batch, t, VOCAB)


# =============================== parameter init ===============================

def init_params(key):
    keys = iter(jax.random.split(key, 64))

    def dense(shape, scale=0.02):
        return jax.random.normal(next(keys), shape, jnp.float32) * scale

    def attn_params():
        # Q/K/V fused into one (D, 3D) weight -> single 384-wide MXU matmul.
        return {
            "wqkv": dense((HIDDEN, 3 * HIDDEN)),
            "bqkv": jnp.zeros((3 * HIDDEN,)),
            "wo": dense((HIDDEN, HIDDEN)),
            "bo": jnp.zeros((HIDDEN,)),
        }

    def layer_params(with_cross=False):
        p = {
            "ln1_g": jnp.ones((HIDDEN,)), "ln1_b": jnp.zeros((HIDDEN,)),
            "self": attn_params(),
            "ln2_g": jnp.ones((HIDDEN,)), "ln2_b": jnp.zeros((HIDDEN,)),
            "fc1_w": dense((HIDDEN, FFN)), "fc1_b": jnp.zeros((FFN,)),
            "fc2_w": dense((FFN, HIDDEN)), "fc2_b": jnp.zeros((HIDDEN,)),
        }
        if with_cross:
            p["lnx_g"] = jnp.ones((HIDDEN,))
            p["lnx_b"] = jnp.zeros((HIDDEN,))
            p["cross"] = attn_params()
        return p

    return {
        "patch_w": dense((CH * PATCH * PATCH, HIDDEN)),
        "patch_b": jnp.zeros((HIDDEN,)),
        "enc_pos": dense((S_ENC, HIDDEN)),
        "enc": layer_params(False),
        "enc_lnf_g": jnp.ones((HIDDEN,)), "enc_lnf_b": jnp.zeros((HIDDEN,)),
        "tok_emb": dense((VOCAB, HIDDEN)),
        "dec_pos": dense((T_DEC, HIDDEN)),
        "dec": layer_params(True),
        "dec_lnf_g": jnp.ones((HIDDEN,)), "dec_lnf_b": jnp.zeros((HIDDEN,)),
        "lm_w": dense((HIDDEN, VOCAB)),
        "lm_b": jnp.zeros((VOCAB,)),
    }


# ==================================== main ====================================

if __name__ == "__main__":
    key = jax.random.PRNGKey(0)
    kp, kx, kl, kd = jax.random.split(key, 4)

    params = init_params(kp)
    pixel_values = jax.random.normal(kx, (B, CH, IMG, IMG), jnp.float32)
    labels = jax.random.randint(kl, (B, T_DEC), 2, VOCAB, dtype=jnp.int32)

    loss, logits = regularized_trocr_forward(
        params, pixel_values, labels,
        training=True, dropout_rate=DROPOUT_RATE, dropout_rng=kd)

    jax.block_until_ready((loss, logits))
    assert logits.shape == (B, T_DEC, VOCAB)
    assert loss.shape == ()
    assert bool(jnp.isfinite(loss))
    print("KERNEL_OK")
</pallas_src>

<mosaic_0001>
module attributes {stable_mosaic.version = 11 : i64} {
  func.func @_patch_embed_kernel(%arg0: memref<8x768xf32, #tpu.memory_space<vmem>>, %arg1: memref<768x128xf32, #tpu.memory_space<vmem>>, %arg2: memref<1x128xf32, #tpu.memory_space<vmem>>, %arg3: memref<8x128xf32, #tpu.memory_space<vmem>>, %arg4: memref<8x128xf32, #tpu.memory_space<vmem>>) attributes {dimension_semantics = [], scalar_prefetch = 0 : i64, scratch_operands = 0 : i64, tpu.core_type = #tpu.core_type<tc>} {
    %c0 = arith.constant 0 : index
    %c0_0 = arith.constant 0 : index
    %0 = vector.load %arg0[%c0, %c0_0] : memref<8x768xf32, #tpu.memory_space<vmem>>, vector<8x768xf32>
    %c0_1 = arith.constant 0 : index
    %c0_2 = arith.constant 0 : index
    %1 = vector.load %arg1[%c0_1, %c0_2] : memref<768x128xf32, #tpu.memory_space<vmem>>, vector<768x128xf32>
    %cst = arith.constant dense<0.000000e+00> : vector<8x128xf32>
    %2 = tpu.matmul %0, %1, %cst {dimension_numbers = #tpu.dot_dimension_numbers<[1], [0], [0], [1], [0, 0, 1, 1], [], []>} : vector<8x768xf32>, vector<768x128xf32>, vector<8x128xf32> -> vector<8x128xf32>
    %c0_3 = arith.constant 0 : index
    %c0_4 = arith.constant 0 : index
    %3 = vector.load %arg2[%c0_3, %c0_4] : memref<1x128xf32, #tpu.memory_space<vmem>>, vector<1x128xf32>
    %4 = vector.broadcast %3 : vector<1x128xf32> to vector<8x128xf32>
    %5 = arith.addf %2, %4 : vector<8x128xf32>
    %c0_5 = arith.constant 0 : index
    %c0_6 = arith.constant 0 : index
    %6 = vector.load %arg3[%c0_5, %c0_6] : memref<8x128xf32, #tpu.memory_space<vmem>>, vector<8x128xf32>
    %7 = arith.addf %5, %6 : vector<8x128xf32>
    %c0_7 = arith.constant 0 : index
    %c0_8 = arith.constant 0 : index
    %8 = vector.load %arg4[%c0_7, %c0_8] : memref<8x128xf32, #tpu.memory_space<vmem>>, vector<8x128xf32>
    tpu.vector_store %arg4[%c0_7, %c0_8], %7 {strides = array<i32>} : memref<8x128xf32, #tpu.memory_space<vmem>>, vector<8x128xf32>,
    return
  }
}

</mosaic_0001>

<bundles_post_ra>
// kernel: tpu_custom_call.1
= control target key start
LH: loop header
LB: loop body
LE: loop exit
PB: predicated region body
PF: predicated region fallthrough
CT: control target
= control target key end

     0   :  { %9 = vsyncpa [#allocation3], 0  ;;  %s463_s0 = inlined_call_operand.hbm [shape: f32[8,768], index: 0, kind: input, shape index: {}]   ;;  %s464_s1 = inlined_call_operand.hbm [shape: f32[768,128], index: 1, kind: input, shape index: {}]   ;;  %s465_s2 = inlined_call_operand.vmem [shape: f32[1,128], index: 2, kind: input, shape index: {}]   ;;  %s466_s3 = inlined_call_operand.hbm [shape: f32[8,128], index: 3, kind: input, shape index: {}]   ;;  %s467_s4 = inlined_call_operand.hbm [shape: f32[8,128], index: 4, kind: output, shape index: {}]  }
   0x1   :  { %10 = vsyncpa [#allocation6], 0  ;;  %s27_s17 = sshll.u32 %s464_s1, 4  ;;  %s28_s17 = int_to_ptr.hbm [resolvable:$true] %s27_s17 }
   0x2   :  { %11 = vsyncpa [#allocation4], 0  ;;  %s417_s18 = smov [#allocation5]   ;;  %s17_s22 = sshll.u32 %s463_s0, 4  ;;  %s18_s22 = int_to_ptr.hbm [resolvable:$true] %s17_s22 }
   0x3   :  { %s29_s19 = sshll.u32 %s417_s18, 4  ;;  %s418_s23 = smov 128   ;;  %s30_s19 = int_to_ptr.vmem [resolvable:$true] %s29_s19 }
   0x4   :  { %s419_s24 = smov 8   ;;  %s420_s25 = smov [#allocation2]  }
   0x5   :  { %35 = dma.hbm_to_vmem [thread:$0]  %s28_s17, 12288, %s30_s19, [#allocation6], %s418_s23, %s418_s23, %s419_s24  }
   0x6   :  { %s19_s26 = sshll.u32 %s420_s25, 4  ;;  %s43_s29 = sshll.u32 %s466_s3, 4  ;;  %s20_s26 = int_to_ptr.vmem [resolvable:$true] %s19_s26  ;;  %s44_s29 = int_to_ptr.hbm [resolvable:$true] %s43_s29 }
   0x7   :  { %22 = dma.hbm_to_vmem [thread:$0]  %s18_s22, 768, %s20_s26, [#allocation3]  }
   0x8   :  { %s421_s1 = smov [#allocation7]  }
   0x9   :  { %s45_s30 = sshll.u32 %s421_s1, 4  ;;  %s46_s30 = int_to_ptr.vmem [resolvable:$true] %s45_s30 }
   0xa   :  { %48 = dma.hbm_to_vmem [thread:$0]  %s44_s29, 128, %s46_s30, [#allocation6]  }
   0xb   :  { %411 = dma.done.wait [#allocation3], 768  }
   0xc   :  { %412 = vsyncadd [#allocation3], 4294966528 }
   0xd   :  { %413 = dma.done.wait [#allocation6], 12416  }
   0xe   :  { %414 = vsyncadd [#allocation6], 4294954880  ;;  %v82_v0 = vld [vmem:[#allocation5 + $0x78] sm:$0xff]  ;;  %v81_v1 = vld [vmem:[#allocation5 + $0x70] sm:$0xff]  ;;  %s422_s5 = smov [#allocation8]   ;;  %s297_s9 = sshll.u32 %s467_s4, 4  ;;  %s298_s9 = int_to_ptr.hbm [resolvable:$true] %s297_s9 }
   0xf   :  { %v98_v2 = vld [vmem:[#allocation5 + $0xf8] sm:$0xff]  ;;  %167 = vmatpush.msra.mxu0 %v82_v0  ;;  %v97_v3 = vld [vmem:[#allocation5 + $0xf0] sm:$0xff]  ;;  %v80_v4 = vld [vmem:[#allocation5 + $0x68] sm:$0xff]  ;;  %s295_s6 = sshll.u32 %s422_s5, 4  ;;  %s296_s6 = int_to_ptr.vmem [resolvable:$true] %s295_s6 }
  0x10   :  { %187 = vmatpush.msra.mxu1 %v98_v2  ;;  %v96_v5 = vld [vmem:[#allocation5 + $0xe8] sm:$0xff]  ;;  %v79_v6 = vld [vmem:[#allocation5 + $0x60] sm:$0xff]  ;;  %v78_v8 = vld [vmem:[#allocation5 + $0x58] sm:$0xff] }
  0x11   :  { %168 = vmatpush.msra.mxu0 %v81_v1  ;;  %v95_v7 = vld [vmem:[#allocation5 + $0xe0] sm:$0xff]  ;;  %v94_v9 = vld [vmem:[#allocation5 + $0xd8] sm:$0xff]  ;;  %v77_v10 = vld [vmem:[#allocation5 + $0x50] sm:$0xff] }
  0x12   :  { %188 = vmatpush.msra.mxu1 %v97_v3  ;;  %v114_v11 = vld [vmem:[#allocation5 + $0x178] sm:$0xff]  ;;  %v93_v12 = vld [vmem:[#allocation5 + $0xd0] sm:$0xff]  ;;  %v112_v15 = vld [vmem:[#allocation5 + $0x168] sm:$0xff] }
  0x13   :  { %169 = vmatpush.msra.mxu0 %v80_v4  ;;  %207 = vmatpush.msra.mxu2 %v114_v11  ;;  %v113_v13 = vld [vmem:[#allocation5 + $0x170] sm:$0xff]  ;;  %v130_v14 = vld [vmem:[#allocation5 + $0x1f8] sm:$0xff]  ;;  %v76_v17 = vld [vmem:[#allocation5 + $0x48] sm:$0xff] }
  0x14   :  { %189 = vmatpush.msra.mxu1 %v96_v5  ;;  %v129_v16 = vld [vmem:[#allocation5 + $0x1f0] sm:$0xff]  ;;  %v92_v18 = vld [vmem:[#allocation5 + $0xc8] sm:$0xff]  ;;  %227 = vmatpush.msra.mxu3 %v130_v14  ;;  %v111_v19 = vld [vmem:[#allocation5 + $0x160] sm:$0xff] }
  0x15   :  { %170 = vmatpush.msra.mxu0 %v79_v6  ;;  %208 = vmatpush.msra.mxu2 %v113_v13  ;;  %v128_v20 = vld [vmem:[#allocation5 + $0x1e8] sm:$0xff]  ;;  %v75_v21 = vld [vmem:[#allocation5 + $0x40] sm:$0xff]  ;;  %v110_v23 = vld [vmem:[#allocation5 + $0x158] sm:$0xff] }
  0x16   :  { %190 = vmatpush.msra.mxu1 %v95_v7  ;;  %v91_v22 = vld [vmem:[#allocation5 + $0xc0] sm:$0xff]  ;;  %228 = vmatpush.msra.mxu3 %v129_v16  ;;  %v74_v25 = vld [vmem:[#allocation5 + $0x38] sm:$0xff]  ;;  %v109_v27 = vld [vmem:[#allocation5 + $0x150] sm:$0xff] }
  0x17   :  { %171 = vmatpush.msra.mxu0 %v78_v8  ;;  %209 = vmatpush.msra.mxu2 %v112_v15  ;;  %v127_v24 = vld [vmem:[#allocation5 + $0x1e0] sm:$0xff]  ;;  %v90_v26 = vld [vmem:[#allocation5 + $0xb8] sm:$0xff]  ;;  %v73_v29 = vld [vmem:[#allocation5 + $0x30] sm:$0xff] }
  0x18   :  { %191 = vmatpush.msra.mxu1 %v94_v9  ;;  %229 = vmatpush.msra.mxu3 %v128_v20  ;;  %v126_v28 = vld [vmem:[#allocation5 + $0x1d8] sm:$0xff]  ;;  %v89_v30 = vld [vmem:[#allocation5 + $0xb0] sm:$0xff]  ;;  %v108_v31 = vld [vmem:[#allocation5 + $0x148] sm:$0xff] }
  0x19   :  { %172 = vmatpush.msra.mxu0 %v77_v10  ;;  %210 = vmatpush.msra.mxu2 %v111_v19  ;;  %v125_v32 = vld [vmem:[#allocation5 + $0x1d0] sm:$0xff]  ;;  %v72_v33 = vld [vmem:[#allocation5 + $0x28] sm:$0xff]  ;;  %v107_v35 = vld [vmem:[#allocation5 + $0x140] sm:$0xff] }
  0x1a   :  { %192 = vmatpush.msra.mxu1 %v93_v12  ;;  %230 = vmatpush.msra.mxu3 %v127_v24  ;;  %v88_v34 = vld [vmem:[#allocation5 + $0xa8] sm:$0xff]  ;;  %v71_v37 = vld [vmem:[#allocation5 + $0x20] sm:$0xff]  ;;  %v106_v39 = vld [vmem:[#allocation5 + $0x138] sm:$0xff] }
  0x1b   :  { %173 = vmatpush.msra.mxu0 %v76_v17  ;;  %211 = vmatpush.msra.mxu2 %v110_v23  ;;  %v124_v36 = vld [vmem:[#allocation5 + $0x1c8] sm:$0xff]  ;;  %v87_v38 = vld [vmem:[#allocation5 + $0xa0] sm:$0xff]  ;;  %v70_v41 = vld [vmem:[#allocation5 + $0x18] sm:$0xff] }
  0x1c   :  { %193 = vmatpush.msra.mxu1 %v92_v18  ;;  %231 = vmatpush.msra.mxu3 %v126_v28  ;;  %v123_v40 = vld [vmem:[#allocation5 + $0x1c0] sm:$0xff]  ;;  %v86_v42 = vld [vmem:[#allocation5 + $0x98] sm:$0xff]  ;;  %v105_v43 = vld [vmem:[#allocation5 + $0x130] sm:$0xff] }
  0x1d   :  { %174 = vmatpush.msra.mxu0 %v75_v21  ;;  %212 = vmatpush.msra.mxu2 %v109_v27  ;;  %v122_v44 = vld [vmem:[#allocation5 + $0x1b8] sm:$0xff]  ;;  %v69_v45 = vld [vmem:[#allocation5 + $0x10] sm:$0xff]  ;;  %v104_v47 = vld [vmem:[#allocation5 + $0x128] sm:$0xff] }
  0x1e   :  { %194 = vmatpush.msra.mxu1 %v91_v22  ;;  %232 = vmatpush.msra.mxu3 %v125_v32  ;;  %v85_v46 = vld [vmem:[#allocation5 + $0x90] sm:$0xff]  ;;  %v68_v49 = vld [vmem:[#allocation5 + $0x8] sm:$0xff]  ;;  %v103_v51 = vld [vmem:[#allocation5 + $0x120] sm:$0xff] }
  0x1f   :  { %175 = vmatpush.msra.mxu0 %v74_v25  ;;  %213 = vmatpush.msra.mxu2 %v108_v31  ;;  %v121_v48 = vld [vmem:[#allocation5 + $0x1b0] sm:$0xff]  ;;  %v84_v50 = vld [vmem:[#allocation5 + $0x88] sm:$0xff]  ;;  %v67_v53 = vld [vmem:[#allocation5] sm:$0xff] }
  0x20   :  { %195 = vmatpush.msra.mxu1 %v90_v26  ;;  %233 = vmatpush.msra.mxu3 %v124_v36  ;;  %v120_v52 = vld [vmem:[#allocation5 + $0x1a8] sm:$0xff]  ;;  %v83_v54 = vld [vmem:[#allocation5 + $0x80] sm:$0xff]  ;;  %v146_v55 = vld [vmem:[#allocation5 + $0x278] sm:$0xff] }
  0x21   :  { %176 = vmatpush.msra.mxu0 %v73_v29  ;;  %214 = vmatpush.msra.mxu2 %v107_v35  ;;  %v162_v56 = vld [vmem:[#allocation5 + $0x2f8] sm:$0xff]  ;;  %v119_v58 = vld [vmem:[#allocation5 + $0x1a0] sm:$0xff]  ;;  %v145_v59 = vld [vmem:[#allocation5 + $0x270] sm:$0xff] }
  0x22   :  { %196 = vmatpush.msra.mxu1 %v89_v30  ;;  %234 = vmatpush.msra.mxu3 %v123_v40  ;;  %v102_v57 = vld [vmem:[#allocation5 + $0x118] sm:$0xff]  ;;  %v161_v60 = vld [vmem:[#allocation5 + $0x2f0] sm:$0xff]  ;;  %v144_v63 = vld [vmem:[#allocation5 + $0x268] sm:$0xff] }
  0x23   :  { %177 = vmatpush.msra.mxu0 %v72_v33  ;;  %215 = vmatpush.msra.mxu2 %v106_v39  ;;  %v101_v61 = vld [vmem:[#allocation5 + $0x110] sm:$0xff]  ;;  %v118_v62 = vld [vmem:[#allocation5 + $0x198] sm:$0xff]  ;;  %v160_v0 = vld [vmem:[#allocation5 + $0x2e8] sm:$0xff] }
  0x24   :  { %197 = vmatpush.msra.mxu1 %v88_v34  ;;  %235 = vmatpush.msra.mxu3 %v122_v44  ;;  %v100_v1 = vld [vmem:[#allocation5 + $0x108] sm:$0xff]  ;;  %v117_v2 = vld [vmem:[#allocation5 + $0x190] sm:$0xff]  ;;  %v143_v3 = vld [vmem:[#allocation5 + $0x260] sm:$0xff] }
  0x25   :  { %178 = vmatpush.msra.mxu0 %v71_v37  ;;  %216 = vmatpush.msra.mxu2 %v105_v43  ;;  %v159_v4 = vld [vmem:[#allocation5 + $0x2e0] sm:$0xff]  ;;  %v116_v6 = vld [vmem:[#allocation5 + $0x188] sm:$0xff]  ;;  %v142_v7 = vld [vmem:[#allocation5 + $0x258] sm:$0xff] }
  0x26   :  { %198 = vmatpush.msra.mxu1 %v87_v38  ;;  %236 = vmatpush.msra.mxu3 %v121_v48  ;;  %v99_v5 = vld [vmem:[#allocation5 + $0x100] sm:$0xff]  ;;  %v158_v8 = vld [vmem:[#allocation5 + $0x2d8] sm:$0xff]  ;;  %v141_v11 = vld [vmem:[#allocation5 + $0x250] sm:$0xff] }
  0x27   :  { %179 = vmatpush.msra.mxu0 %v70_v41  ;;  %217 = vmatpush.msra.mxu2 %v104_v47  ;;  %v63_v9 = vld [vmem:[#allocation2 + $0x10] sm:$0xff]  ;;  %v157_v12 = vld [vmem:[#allocation5 + $0x2d0] sm:$0xff]  ;;  %v64_v14 = vld [vmem:[#allocation2 + $0x18] sm:$0xff] }
  0x28   :  { %199 = vmatpush.msra.mxu1 %v86_v42  ;;  %237 = vmatpush.msra.mxu3 %v120_v52  ;;  %v115_v10 = vld [vmem:[#allocation5 + $0x180] sm:$0xff]  ;;  %v61_v13 = vld [vmem:[#allocation2] sm:$0xff]  ;;  %v140_v15 = vld [vmem:[#allocation5 + $0x248] sm:$0xff] }
  0x29   :  { %180 = vmatpush.msra.mxu0 %v69_v45  ;;  %218 = vmatpush.msra.mxu2 %v103_v51  ;;  %v156_v16 = vld [vmem:[#allocation5 + $0x2c8] sm:$0xff]  ;;  %v62_v17 = vld [vmem:[#allocation2 + $0x8] sm:$0xff]  ;;  %v139_v18 = vld [vmem:[#allocation5 + $0x240] sm:$0xff] }
  0x2a   :  { %200 = vmatpush.msra.mxu1 %v85_v46  ;;  %238 = vmatpush.msra.mxu3 %v119_v58  ;;  %v155_v19 = vld [vmem:[#allocation5 + $0x2c0] sm:$0xff]  ;;  %v138_v20 = vld [vmem:[#allocation5 + $0x238] sm:$0xff]  ;;  %v137_v22 = vld [vmem:[#allocation5 + $0x230] sm:$0xff] }
  0x2b   :  { %181 = vmatpush.msra.mxu0 %v68_v49  ;;  %219 = vmatpush.msra.mxu2 %v102_v57  ;;  %v154_v21 = vld [vmem:[#allocation5 + $0x2b8] sm:$0xff]  ;;  %v153_v23 = vld [vmem:[#allocation5 + $0x2b0] sm:$0xff]  ;;  %v136_v24 = vld [vmem:[#allocation5 + $0x228] sm:$0xff] }
  0x2c   :  { %201 = vmatpush.msra.mxu1 %v84_v50  ;;  %239 = vmatpush.msra.mxu3 %v118_v62  ;;  %v152_v25 = vld [vmem:[#allocation5 + $0x2a8] sm:$0xff]  ;;  %v135_v26 = vld [vmem:[#allocation5 + $0x220] sm:$0xff]  ;;  %v134_v28 = vld [vmem:[#allocation5 + $0x218] sm:$0xff] }
  0x2d   :  { %182 = vmatpush.msra.mxu0 %v67_v53  ;;  %220 = vmatpush.msra.mxu2 %v101_v61  ;;  %v151_v27 = vld [vmem:[#allocation5 + $0x2a0] sm:$0xff]  ;;  %v150_v29 = vld [vmem:[#allocation5 + $0x298] sm:$0xff]  ;;  %v133_v30 = vld [vmem:[#allocation5 + $0x210] sm:$0xff] }
  0x2e   :  { %202 = vmatpush.msra.mxu1 %v83_v54  ;;  %240 = vmatpush.msra.mxu3 %v117_v2  ;;  %v149_v31 = vld [vmem:[#allocation5 + $0x290] sm:$0xff]  ;;  %v132_v32 = vld [vmem:[#allocation5 + $0x208] sm:$0xff]  ;;  %v131_v34 = vld [vmem:[#allocation5 + $0x200] sm:$0xff] }
  0x2f   :  { %247 = vmatpush.msrb.mxu0 %v146_v55  ;;  %221 = vmatpush.msra.mxu2 %v100_v1  ;;  %v148_v33 = vld [vmem:[#allocation5 + $0x288] sm:$0xff]  ;;  %v147_v35 = vld [vmem:[#allocation5 + $0x280] sm:$0xff]  ;;  %v65_v36 = vld [vmem:[#allocation2 + $0x20] sm:$0xff] }
  0x30   :  { %267 = vmatpush.msrb.mxu1 %v162_v56  ;;  %241 = vmatpush.msra.mxu3 %v116_v6  ;;  %v66_v37 = vld [vmem:[#allocation2 + $0x28] sm:$0xff]  ;;  %v314_v38 = vld [vmem:[%s465_s2] ss:$0 sm:$0xff]  ;;  %v287_v50 = vld [vmem:[#allocation7] sm:$0xff] }
  0x31   :  { %248 = vmatpush.msrb.mxu0 %v145_v59  ;;  %222 = vmatpush.msra.mxu2 %v99_v5 }
  0x32   :  { %268 = vmatpush.msrb.mxu1 %v161_v60  ;;  %223 = vmatmul.f32.vlgmr.msra.gmra.mxu2 %v63_v9 }
  0x33   :  { %249 = vmatpush.msrb.mxu0 %v144_v63  ;;  %242 = vmatpush.msra.mxu3 %v115_v10 }
  0x34   :  { %269 = vmatpush.msrb.mxu1 %v160_v0  ;;  %183 = vmatmul.f32.vlgmr.msra.gmra.mxu0 %v61_v13 }
  0x35   :  { %250 = vmatpush.msrb.mxu0 %v143_v3  ;;  %243 = vmatmul.f32.vlgmr.msra.gmra.mxu3 %v64_v14 }
  0x36   :  { %270 = vmatpush.msrb.mxu1 %v159_v4 }
  0x37   :  { %251 = vmatpush.msrb.mxu0 %v142_v7  ;;  %203 = vmatmul.f32.vlgmr.msra.gmra.mxu1 %v62_v17 }
  0x38   :  { %271 = vmatpush.msrb.mxu1 %v158_v8 }
  0x39   :  { %252 = vmatpush.msrb.mxu0 %v141_v11 }
  0x3a   :  { %272 = vmatpush.msrb.mxu1 %v157_v12 }
  0x3b   :  { %253 = vmatpush.msrb.mxu0 %v140_v15 }
  0x3c   :  { %273 = vmatpush.msrb.mxu1 %v156_v16 }
  0x3d   :  { %254 = vmatpush.msrb.mxu0 %v139_v18 }
  0x3e   :  { %274 = vmatpush.msrb.mxu1 %v155_v19 }
  0x3f   :  { %255 = vmatpush.msrb.mxu0 %v138_v20 }
  0x40   :  { %275 = vmatpush.msrb.mxu1 %v154_v21 }
  0x41   :  { %256 = vmatpush.msrb.mxu0 %v137_v22 }
  0x42   :  { %276 = vmatpush.msrb.mxu1 %v153_v23 }
  0x43   :  { %257 = vmatpush.msrb.mxu0 %v136_v24 }
  0x44   :  { %277 = vmatpush.msrb.mxu1 %v152_v25 }
  0x45   :  { %258 = vmatpush.msrb.mxu0 %v135_v26 }
  0x46   :  { %278 = vmatpush.msrb.mxu1 %v151_v27 }
  0x47   :  { %259 = vmatpush.msrb.mxu0 %v134_v28 }
  0x48   :  { %279 = vmatpush.msrb.mxu1 %v150_v29 }
  0x49   :  { %260 = vmatpush.msrb.mxu0 %v133_v30 }
  0x4a   :  { %280 = vmatpush.msrb.mxu1 %v149_v31 }
  0x4b   :  { %261 = vmatpush.msrb.mxu0 %v132_v32 }
  0x4c   :  { %281 = vmatpush.msrb.mxu1 %v148_v33 }
  0x4d   :  { %262 = vmatpush.msrb.mxu0 %v131_v34 }
  0x4e   :  { %282 = vmatpush.msrb.mxu1 %v147_v35  ;;  %263 = vmatmul.f32.vlgmr.msrb.gmra.mxu0 %v65_v36 }
  0x4f   :  { %283 = vmatmul.f32.vlgmr.msrb.gmra.mxu1 %v66_v37 }
  0xb1   :  { %v184_v39 = vpop.f32.mrf.mxu0 }
  0xb2   :  { %v185_v40 = vadd.f32 %v314_v38, %v184_v39 }
  0xb4   :  { %v204_v41 = vpop.f32.mrf.mxu1 }
  0xb5   :  { %v205_v42 = vadd.f32 %v204_v41, %v185_v40  ;;  %v224_v43 = vpop.f32.mrf.mxu2 }
  0xb7   :  { %v225_v44 = vadd.f32 %v224_v43, %v205_v42 }
  0xb8   :  { %v244_v45 = vpop.f32.mrf.mxu3 }
  0xb9   :  { %v245_v46 = vadd.f32 %v244_v45, %v225_v44 }
  0xcb   :  { %v264_v47 = vpop.f32.mrf.mxu0 }
  0xcc   :  { %v284_v48 = vpop.f32.mrf.mxu1  ;;  %v265_v49 = vadd.f32 %v264_v47, %v245_v46 }
  0xce   :  { %v285_v51 = vadd.f32 %v284_v48, %v265_v49 }
  0xd0   :  { %v288_v52 = vadd.f32 %v287_v50, %v285_v51 }
  0xd2   :  { %289 = vst [vmem:[#allocation8] sm:$0xff] %v288_v52 }
  0xd3   :  { %300 = dma.vmem_to_hbm [thread:$0]  %s296_s6, 128, %s298_s9, [#allocation4]  }
  0xd4   :  { %415 = dma.done.wait [#allocation4], 128  }
  0xd5   :  { %416 = vsyncadd [#allocation4], 4294967168 }
  0xd6   :  { %305 = vsyncpa [#allocation3], 1 }
  0xd7   :  { %306 = vsyncpa [#allocation6], 1 }
  0xd8   :  { %307 = vsyncpa [#allocation4], 1 }

</bundles_post_ra>
